<compile_context>
chip_gen: v7x
topology: tpu7x:2x2x1
jax: 0.10.0
libtpu: 0.0.40
codegen_flags: <defaults>
</compile_context>

<pallas_src>
import jax
import jax.numpy as jnp
from jax.experimental import pallas as pl
from jax.experimental.pallas import tpu as pltpu

BN_EPS = 1e-5


def _make_kernel(D, H2, H3, B):
    inv_b = 1.0 / B

    def kernel(x_ref, wa_ref, wb_ref, wc_ref, p_ref, o_ref):
        # x_ref : (B, D)    activations of this block (grid axis picks block 0/1)
        # wa    : (D, D)  wb : (D, H2)  wc : (H2, H3)   pre-transposed Linear weights
        # p_ref : (8, PW)   packed rows [g1; be1; g2; be2; b_last], lane-padded
        # o_ref : (B, H3)
        x = x_ref[...]
        p = p_ref[...]
        g1, be1 = p[0:1, :D], p[1:2, :D]
        g2, be2 = p[2:3, :H2], p[3:4, :H2]
        b_last = p[4:5, :H3]

        # ---- layer1 -> BN1 (batch stats) -> ReLU ----
        # Linear bias omitted: exactly cancelled by the BN mean subtraction.
        h = jnp.dot(x, wa_ref[...], preferred_element_type=jnp.float32)
        m1 = jnp.sum(h, axis=0, keepdims=True) * inv_b
        v1 = jnp.sum(h * h, axis=0, keepdims=True) * inv_b - m1 * m1
        h = jnp.maximum((h - m1) * (jax.lax.rsqrt(v1 + BN_EPS) * g1) + be1, 0.0)

        # ---- layer2 -> BN2 (batch stats) -> ReLU ----
        h2 = jnp.dot(h, wb_ref[...], preferred_element_type=jnp.float32)
        m2 = jnp.sum(h2, axis=0, keepdims=True) * inv_b
        v2 = jnp.sum(h2 * h2, axis=0, keepdims=True) * inv_b - m2 * m2
        h2 = jnp.maximum((h2 - m2) * (jax.lax.rsqrt(v2 + BN_EPS) * g2) + be2, 0.0)

        # ---- layer3 (keeps its bias, no activation) ----
        o_ref[...] = (jnp.dot(h2, wc_ref[...], preferred_element_type=jnp.float32)
                      + b_last).astype(o_ref.dtype)

    return kernel


def _fused_forward(x, wa, wb, wc, pslab):
    # x: (2, B, D), wa: (2, D, D), wb: (2, D, H2), wc: (2, H2, H3), pslab: (2, 8, PW)
    _, B, D = x.shape
    H2 = wb.shape[2]
    H3 = wc.shape[2]
    PW = pslab.shape[2]
    kernel = _make_kernel(D, H2, H3, B)
    sq = pl.Squeezed()

    out = pl.pallas_call(
        kernel,
        out_shape=jax.ShapeDtypeStruct((2, B, H3), jnp.float32),
        grid=(2,),
        in_specs=[
            pl.BlockSpec((sq, B, D), lambda i: (i, 0, 0)),      # x (both blocks)
            pl.BlockSpec((sq, D, D), lambda i: (i, 0, 0)),      # W1 / W4
            pl.BlockSpec((sq, D, H2), lambda i: (i, 0, 0)),     # W2 / W5
            pl.BlockSpec((sq, H2, H3), lambda i: (i, 0, 0)),    # W3 / W6
            pl.BlockSpec((sq, 8, PW), lambda i: (i, 0, 0)),     # packed small params
        ],
        out_specs=pl.BlockSpec((sq, B, H3), lambda i: (i, 0, 0)),
        compiler_params=pltpu.CompilerParams(
            dimension_semantics=("parallel",)),  # v7x: one block per TensorCore
    )(x, wa, wb, wc, pslab)
    return out[0], out[1]


_fused_forward = jax.jit(_fused_forward)


class SimpleRankNetPallas:
    """JAX/Pallas port of SimpleRankNet. Params initialized deterministically."""

    def __init__(self, vec_dimension, out2, out3, key):
        D = vec_dimension * 3
        self.vec_dimension = vec_dimension
        ks = jax.random.split(key, 12)

        def linear(kw, kb, fan_in, fan_out):
            # PyTorch default Linear init: U(-1/sqrt(fan_in), 1/sqrt(fan_in)).
            bound = 1.0 / jnp.sqrt(fan_in)
            w = jax.random.uniform(kw, (fan_in, fan_out), jnp.float32, -bound, bound)
            b = jax.random.uniform(kb, (1, fan_out), jnp.float32, -bound, bound)
            return w, b

        # Linears stored as (in, out), i.e. transposed vs torch, so kernel does x @ W.
        self.w1, self.b1 = linear(ks[0], ks[1], D, D)
        self.w2, self.b2 = linear(ks[2], ks[3], D, out2)
        self.w3, self.b3 = linear(ks[4], ks[5], out2, out3)
        self.w4, self.b4 = linear(ks[6], ks[7], D, D)
        self.w5, self.b5 = linear(ks[8], ks[9], D, out2)
        self.w6, self.b6 = linear(ks[10], ks[11], out2, out3)
        # Shared BatchNorm1d affine params (PyTorch init: gamma=1, beta=0).
        self.g1 = jnp.ones((1, D), jnp.float32)
        self.be1 = jnp.zeros((1, D), jnp.float32)
        self.g2 = jnp.ones((1, out2), jnp.float32)
        self.be2 = jnp.zeros((1, out2), jnp.float32)

        # ---- one-time packing of kernel parameters (done at init, not per call) ----
        self.wa = jnp.stack([self.w1, self.w4])      # (2, D, D)
        self.wb = jnp.stack([self.w2, self.w5])      # (2, D, H2)
        self.wc = jnp.stack([self.w3, self.w6])      # (2, H2, H3)

        # Packed small-vector slab: one (8, PW) fp32 tile per block, rows are
        # [gamma1, beta1, gamma2, beta2, final-layer bias], each starting at lane 0.
        PW = max(128, -(-max(D, out2, out3) // 128) * 128)

        def pack(b_last):
            slab = jnp.zeros((8, PW), jnp.float32)
            slab = slab.at[0, :D].set(self.g1[0])
            slab = slab.at[1, :D].set(self.be1[0])
            slab = slab.at[2, :out2].set(self.g2[0])
            slab = slab.at[3, :out2].set(self.be2[0])
            slab = slab.at[4, :out3].set(b_last[0])
            return slab

        self.pslab = jnp.stack([pack(self.b3), pack(self.b6)])  # (2, 8, PW)
        # b1/b2/b4/b5 are intentionally NOT fed to the kernel: a bias added right
        # before BatchNorm is exactly cancelled by the batch-mean subtraction.

    def __call__(self, x):
        # x: (2, B, vec_dimension*3) — the stacked (comb1, comb2) pair.
        return _fused_forward(x, self.wa, self.wb, self.wc, self.pslab)


def _reference(model, x):
    """Pure-JAX reference of the exact PyTorch forward (biases included)."""
    def block(xb, w1, b1, w2, b2, w3, b3):
        h = xb @ w1 + b1
        m = h.mean(0, keepdims=True)
        v = ((h - m) ** 2).mean(0, keepdims=True)
        h = jnp.maximum((h - m) / jnp.sqrt(v + BN_EPS) * model.g1 + model.be1, 0.0)
        h2 = h @ w2 + b2
        m2 = h2.mean(0, keepdims=True)
        v2 = ((h2 - m2) ** 2).mean(0, keepdims=True)
        h2 = jnp.maximum((h2 - m2) / jnp.sqrt(v2 + BN_EPS) * model.g2 + model.be2, 0.0)
        return h2 @ w3 + b3

    o1 = block(x[0], model.w1, model.b1, model.w2, model.b2, model.w3, model.b3)
    o2 = block(x[1], model.w4, model.b4, model.w5, model.b5, model.w6, model.b6)
    return o1, o2


if __name__ == "__main__":
    key = jax.random.PRNGKey(0)
    k_param, k_x = jax.random.split(key)

    vec_dimension = 16          # -> feature dim D = 48
    out2, out3 = 32, 8
    batch = 8

    model = SimpleRankNetPallas(vec_dimension, out2, out3, k_param)
    x = jax.random.normal(k_x, (2, batch, vec_dimension * 3), jnp.float32)

    o1, o2 = model(x)
    o1 = jax.block_until_ready(o1)
    o2 = jax.block_until_ready(o2)

    r1, r2 = _reference(model, x)
    assert o1.shape == (batch, out3) and o2.shape == (batch, out3)
    assert jnp.allclose(o1, r1, atol=1e-4, rtol=1e-4)
    assert jnp.allclose(o2, r2, atol=1e-4, rtol=1e-4)

    print("KERNEL_OK")
</pallas_src>

<mosaic_0001>
module attributes {stable_mosaic.version = 11 : i64} {
  func.func @kernel(%arg0: i32, %arg1: memref<1x8x48xf32, #tpu.memory_space<vmem>>, %arg2: memref<1x48x48xf32, #tpu.memory_space<vmem>>, %arg3: memref<1x48x32xf32, #tpu.memory_space<vmem>>, %arg4: memref<1x32x8xf32, #tpu.memory_space<vmem>>, %arg5: memref<1x8x128xf32, #tpu.memory_space<vmem>>, %arg6: memref<1x8x8xf32, #tpu.memory_space<vmem>>) attributes {dimension_semantics = [#tpu.dimension_semantics<parallel>], iteration_bounds = array<i64: 2>, scalar_prefetch = 0 : i64, scratch_operands = 0 : i64, tpu.core_type = #tpu.core_type<tc>, window_params = [{transform_indices = @transform_0, window_bounds = array<i64: 1, 8, 48>}, {transform_indices = @transform_1, window_bounds = array<i64: 1, 48, 48>}, {transform_indices = @transform_2, window_bounds = array<i64: 1, 48, 32>}, {transform_indices = @transform_3, window_bounds = array<i64: 1, 32, 8>}, {transform_indices = @transform_4, window_bounds = array<i64: 1, 8, 128>}, {transform_indices = @transform_5, window_bounds = array<i64: 1, 8, 8>}]} {
    %c0 = arith.constant 0 : index
    %c0_0 = arith.constant 0 : index
    %c0_1 = arith.constant 0 : index
    %0 = vector.load %arg1[%c0, %c0_0, %c0_1] : memref<1x8x48xf32, #tpu.memory_space<vmem>>, vector<1x8x48xf32>
    %1 = vector.shape_cast %0 : vector<1x8x48xf32> to vector<8x48xf32>
    %c0_2 = arith.constant 0 : index
    %c0_3 = arith.constant 0 : index
    %c0_4 = arith.constant 0 : index
    %2 = vector.load %arg5[%c0_2, %c0_3, %c0_4] : memref<1x8x128xf32, #tpu.memory_space<vmem>>, vector<1x8x128xf32>
    %3 = vector.shape_cast %2 : vector<1x8x128xf32> to vector<8x128xf32>
    %4 = vector.extract_strided_slice %3 {offsets = [0, 0], sizes = [1, 48], strides = [1, 1]} : vector<8x128xf32> to vector<1x48xf32>
    %5 = vector.extract_strided_slice %3 {offsets = [1, 0], sizes = [1, 48], strides = [1, 1]} : vector<8x128xf32> to vector<1x48xf32>
    %6 = vector.extract_strided_slice %3 {offsets = [2, 0], sizes = [1, 32], strides = [1, 1]} : vector<8x128xf32> to vector<1x32xf32>
    %7 = vector.extract_strided_slice %3 {offsets = [3, 0], sizes = [1, 32], strides = [1, 1]} : vector<8x128xf32> to vector<1x32xf32>
    %8 = vector.extract_strided_slice %3 {offsets = [4, 0], sizes = [1, 8], strides = [1, 1]} : vector<8x128xf32> to vector<1x8xf32>
    %c0_5 = arith.constant 0 : index
    %c0_6 = arith.constant 0 : index
    %c0_7 = arith.constant 0 : index
    %9 = vector.load %arg2[%c0_5, %c0_6, %c0_7] : memref<1x48x48xf32, #tpu.memory_space<vmem>>, vector<1x48x48xf32>
    %10 = vector.shape_cast %9 : vector<1x48x48xf32> to vector<48x48xf32>
    %cst = arith.constant dense<0.000000e+00> : vector<8x48xf32>
    %11 = tpu.matmul %1, %10, %cst {dimension_numbers = #tpu.dot_dimension_numbers<[1], [0], [0], [1], [0, 0, 1, 1], [], []>} : vector<8x48xf32>, vector<48x48xf32>, vector<8x48xf32> -> vector<8x48xf32>
    %cst_8 = arith.constant dense<0.000000e+00> : vector<48xf32>
    %12 = vector.multi_reduction <add>, %11, %cst_8 [0] : vector<8x48xf32> to vector<48xf32>
    %13 = vector.shape_cast %12 : vector<48xf32> to vector<1x48xf32>
    %cst_9 = arith.constant 1.250000e-01 : f32
    %14 = vector.broadcast %cst_9 : f32 to vector<1x48xf32>
    %15 = arith.mulf %13, %14 : vector<1x48xf32>
    %16 = arith.mulf %11, %11 : vector<8x48xf32>
    %cst_10 = arith.constant dense<0.000000e+00> : vector<48xf32>
    %17 = vector.multi_reduction <add>, %16, %cst_10 [0] : vector<8x48xf32> to vector<48xf32>
    %18 = vector.shape_cast %17 : vector<48xf32> to vector<1x48xf32>
    %cst_11 = arith.constant 1.250000e-01 : f32
    %19 = vector.broadcast %cst_11 : f32 to vector<1x48xf32>
    %20 = arith.mulf %18, %19 : vector<1x48xf32>
    %21 = arith.mulf %15, %15 : vector<1x48xf32>
    %22 = arith.subf %20, %21 : vector<1x48xf32>
    %23 = vector.broadcast %15 : vector<1x48xf32> to vector<8x48xf32>
    %24 = arith.subf %11, %23 : vector<8x48xf32>
    %cst_12 = arith.constant 9.99999974E-6 : f32
    %25 = vector.broadcast %cst_12 : f32 to vector<1x48xf32>
    %26 = arith.addf %22, %25 : vector<1x48xf32>
    %27 = math.rsqrt %26 : vector<1x48xf32>
    %28 = arith.mulf %27, %4 : vector<1x48xf32>
    %29 = vector.broadcast %28 : vector<1x48xf32> to vector<8x48xf32>
    %30 = arith.mulf %24, %29 : vector<8x48xf32>
    %31 = vector.broadcast %5 : vector<1x48xf32> to vector<8x48xf32>
    %32 = arith.addf %30, %31 : vector<8x48xf32>
    %cst_13 = arith.constant 0.000000e+00 : f32
    %33 = vector.broadcast %cst_13 : f32 to vector<8x48xf32>
    %34 = arith.maximumf %32, %33 : vector<8x48xf32>
    %c0_14 = arith.constant 0 : index
    %c0_15 = arith.constant 0 : index
    %c0_16 = arith.constant 0 : index
    %35 = vector.load %arg3[%c0_14, %c0_15, %c0_16] : memref<1x48x32xf32, #tpu.memory_space<vmem>>, vector<1x48x32xf32>
    %36 = vector.shape_cast %35 : vector<1x48x32xf32> to vector<48x32xf32>
    %cst_17 = arith.constant dense<0.000000e+00> : vector<8x32xf32>
    %37 = tpu.matmul %34, %36, %cst_17 {dimension_numbers = #tpu.dot_dimension_numbers<[1], [0], [0], [1], [0, 0, 1, 1], [], []>} : vector<8x48xf32>, vector<48x32xf32>, vector<8x32xf32> -> vector<8x32xf32>
    %cst_18 = arith.constant dense<0.000000e+00> : vector<32xf32>
    %38 = vector.multi_reduction <add>, %37, %cst_18 [0] : vector<8x32xf32> to vector<32xf32>
    %39 = vector.shape_cast %38 : vector<32xf32> to vector<1x32xf32>
    %cst_19 = arith.constant 1.250000e-01 : f32
    %40 = vector.broadcast %cst_19 : f32 to vector<1x32xf32>
    %41 = arith.mulf %39, %40 : vector<1x32xf32>
    %42 = arith.mulf %37, %37 : vector<8x32xf32>
    %cst_20 = arith.constant dense<0.000000e+00> : vector<32xf32>
    %43 = vector.multi_reduction <add>, %42, %cst_20 [0] : vector<8x32xf32> to vector<32xf32>
    %44 = vector.shape_cast %43 : vector<32xf32> to vector<1x32xf32>
    %cst_21 = arith.constant 1.250000e-01 : f32
    %45 = vector.broadcast %cst_21 : f32 to vector<1x32xf32>
    %46 = arith.mulf %44, %45 : vector<1x32xf32>
    %47 = arith.mulf %41, %41 : vector<1x32xf32>
    %48 = arith.subf %46, %47 : vector<1x32xf32>
    %49 = vector.broadcast %41 : vector<1x32xf32> to vector<8x32xf32>
    %50 = arith.subf %37, %49 : vector<8x32xf32>
    %cst_22 = arith.constant 9.99999974E-6 : f32
    %51 = vector.broadcast %cst_22 : f32 to vector<1x32xf32>
    %52 = arith.addf %48, %51 : vector<1x32xf32>
    %53 = math.rsqrt %52 : vector<1x32xf32>
    %54 = arith.mulf %53, %6 : vector<1x32xf32>
    %55 = vector.broadcast %54 : vector<1x32xf32> to vector<8x32xf32>
    %56 = arith.mulf %50, %55 : vector<8x32xf32>
    %57 = vector.broadcast %7 : vector<1x32xf32> to vector<8x32xf32>
    %58 = arith.addf %56, %57 : vector<8x32xf32>
    %cst_23 = arith.constant 0.000000e+00 : f32
    %59 = vector.broadcast %cst_23 : f32 to vector<8x32xf32>
    %60 = arith.maximumf %58, %59 : vector<8x32xf32>
    %c0_24 = arith.constant 0 : index
    %c0_25 = arith.constant 0 : index
    %c0_26 = arith.constant 0 : index
    %61 = vector.load %arg4[%c0_24, %c0_25, %c0_26] : memref<1x32x8xf32, #tpu.memory_space<vmem>>, vector<1x32x8xf32>
    %62 = vector.shape_cast %61 : vector<1x32x8xf32> to vector<32x8xf32>
    %cst_27 = arith.constant dense<0.000000e+00> : vector<8x8xf32>
    %63 = tpu.matmul %60, %62, %cst_27 {dimension_numbers = #tpu.dot_dimension_numbers<[1], [0], [0], [1], [0, 0, 1, 1], [], []>} : vector<8x32xf32>, vector<32x8xf32>, vector<8x8xf32> -> vector<8x8xf32>
    %64 = vector.broadcast %8 : vector<1x8xf32> to vector<8x8xf32>
    %65 = arith.addf %63, %64 : vector<8x8xf32>
    %c0_28 = arith.constant 0 : index
    %c0_29 = arith.constant 0 : index
    %c0_30 = arith.constant 0 : index
    %66 = vector.load %arg6[%c0_28, %c0_29, %c0_30] : memref<1x8x8xf32, #tpu.memory_space<vmem>>, vector<1x8x8xf32>
    %67 = vector.shape_cast %66 : vector<1x8x8xf32> to vector<8x8xf32>
    %68 = vector.shape_cast %65 : vector<8x8xf32> to vector<1x8x8xf32>
    tpu.vector_store %arg6[%c0_28, %c0_29, %c0_30], %68 {strides = array<i32>} : memref<1x8x8xf32, #tpu.memory_space<vmem>>, vector<1x8x8xf32>,
    return
  }
  func.func @transform_0(%arg0: i32) -> (i32, i32, i32) {
    %c0_i32 = arith.constant 0 : i32
    %c0_i32_0 = arith.constant 0 : i32
    %c0_i32_1 = arith.constant 0 : i32
    return %arg0, %c0_i32, %c0_i32_0 : i32, i32, i32
  }
  func.func @transform_1(%arg0: i32) -> (i32, i32, i32) {
    %c0_i32 = arith.constant 0 : i32
    %c0_i32_0 = arith.constant 0 : i32
    %c0_i32_1 = arith.constant 0 : i32
    return %arg0, %c0_i32, %c0_i32_0 : i32, i32, i32
  }
  func.func @transform_2(%arg0: i32) -> (i32, i32, i32) {
    %c0_i32 = arith.constant 0 : i32
    %c0_i32_0 = arith.constant 0 : i32
    %c0_i32_1 = arith.constant 0 : i32
    return %arg0, %c0_i32, %c0_i32_0 : i32, i32, i32
  }
  func.func @transform_3(%arg0: i32) -> (i32, i32, i32) {
    %c0_i32 = arith.constant 0 : i32
    %c0_i32_0 = arith.constant 0 : i32
    %c0_i32_1 = arith.constant 0 : i32
    return %arg0, %c0_i32, %c0_i32_0 : i32, i32, i32
  }
  func.func @transform_4(%arg0: i32) -> (i32, i32, i32) {
    %c0_i32 = arith.constant 0 : i32
    %c0_i32_0 = arith.constant 0 : i32
    %c0_i32_1 = arith.constant 0 : i32
    return %arg0, %c0_i32, %c0_i32_0 : i32, i32, i32
  }
  func.func @transform_5(%arg0: i32) -> (i32, i32, i32) {
    %c0_i32 = arith.constant 0 : i32
    %c0_i32_0 = arith.constant 0 : i32
    %c0_i32_1 = arith.constant 0 : i32
    return %arg0, %c0_i32, %c0_i32_0 : i32, i32, i32
  }
}

</mosaic_0001>

<bundles_post_ra>
// kernel: _fused_forward.1
= control target key start
LH: loop header
LB: loop body
LE: loop exit
PB: predicated region body
PF: predicated region fallthrough
CT: control target
= control target key end

     0   :  { %s870_s18 = smov 0   ;;  %s927_s0 = inlined_call_operand.vmem [shape: f32[2,8,48], index: 0, kind: input, shape index: {}]   ;;  %s928_s1 = inlined_call_operand.vmem [shape: f32[2,48,48], index: 1, kind: input, shape index: {}]   ;;  %s929_s2 = inlined_call_operand.vmem [shape: f32[2,48,32], index: 2, kind: input, shape index: {}]   ;;  %s930_s3 = inlined_call_operand.vmem [shape: f32[2,32,8], index: 3, kind: input, shape index: {}]   ;;  %s931_s4 = inlined_call_operand.vmem [shape: f32[2,8,128], index: 4, kind: input, shape index: {}]   ;;  %s932_s5 = inlined_call_operand.vmem [shape: f32[2,8,8], index: 5, kind: output, shape index: {}]  }
   0x1 LB: > { %s711_s19 = sadd.s32 4294967295, %s835_s18   ;;  %p715_p0 = scmp.ge.s32.totalorder %s835_s18, 1  ;;  %s835_s18 = sphi %s870_s18, %s15_s18  }
   0x2   : > { %p225_p1 = scmp.lt.s32.totalorder %s835_s18, 3 }
   0x4   : > { %p226_p2 = pnand %p715_p0, %p225_p1 }
   0x5   : > { %p270_p3 = scmp.lt.s32.totalorder (!%p226_p2), %s711_s19, 1  ;;  %v837_v0 = vmov (!%p226_p2), 0.0|0.0   ;;  %vm838_vm0 = vmmov (!%p226_p2), 0   ;;  %v839_v1 = vmov (!%p226_p2), 0.0   ;;  %vm305_vm1 = vcmask (!%p226_p2), 392192  }
   0x6   : > { %229 = sbr.rel (%p226_p2) target bundleno = 754 (0x2f2), region = 40  ;;  %789 = vmatprep.subr.bf16.mxu0 (!%p226_p2), %v837_v0  ;;  %760 = vmatprep.mubr.msk.f32.mxu0 (!%p226_p2), %vm838_vm0, %v839_v1  ;;  %v402_v43 = vlaneseq (!%p226_p2)  ;;  %vm492_vm2 = vcmask (!%p226_p2), 261120   ;;  %vm608_vm3 = vcmask (!%p226_p2), 64512  }
   0x7   : > { %798 = vmatprep.subr.bf16.mxu1 (!%p226_p2), %v837_v0  ;;  %775 = vmatprep.mubr.msk.f32.mxu1 (!%p226_p2), %vm838_vm0, %v839_v1 }
   0x8   : > { %v403_v44 = vshrl.u32 (!%p226_p2), %v402_v43, 7 }
   0xa   : > { %v404_v46 = vsub.s32 (!%p226_p2), 0, %v403_v44  ;;  %v409_v47 = vsub.s32 (!%p226_p2), 1, %v403_v44 }
   0xd   : > { %s934_s19 = smov (!%p270_p3, %s711_s19), 1 }
   0xe   : > { %s813_s20 = smul.u32 48, %s934_s19  ;;  %s890_s24 = sshll.u32 %s934_s19, 3 }
   0xf   : > { %s273_s27 = scalar_lea.vmem %s927_s0, %s890_s24  ;;  %s292_s8 = scalar_lea.vmem %s931_s4, %s890_s24 }
  0x10   : > { %s278_s23 = scalar_lea.vmem %s928_s1, %s813_s20  ;;  %v297_v11 = vld [vmem:[%s273_s27] sm:$0xff]  ;;  %s283_s30 = scalar_lea.vmem %s929_s2, %s813_s20 }
  0x11   : > { %v299_v2 = vld [vmem:[%s278_s23] sm:$0xff]  ;;  %v300_v3 = vld [vmem:[%s278_s23 + $0x8] sm:$0xff]  ;;  %v301_v4 = vld [vmem:[%s278_s23 + $0x10] sm:$0xff]  ;;  %s728_s9 = sshll.u32 %s934_s19, 5  ;;  %s296_s15 = scalar_lea.vmem %s932_s5, %s890_s24 }
  0x12   : > { %v790_v5 = vpack.c.bf16 %v300_v3, %v299_v2  ;;  %v302_v6 = vld [vmem:[%s278_s23 + $0x18] sm:$0xff]  ;;  %v303_v8 = vld [vmem:[%s278_s23 + $0x20] sm:$0xff]  ;;  %v304_v9 = vld [vmem:[%s278_s23 + $0x28] sm:$0xff]  ;;  %s288_s12 = scalar_lea.vmem %s930_s3, %s728_s9 }
  0x13   : > { %v793_v7 = vpack.c.bf16 %v302_v6, %v301_v4  ;;  %v796_v10 = vpack.c.bf16 %v304_v9, %v303_v8  ;;  %v413_v12 = vld [vmem:[%s283_s30] sm:$0xff]  ;;  %v414_v13 = vld [vmem:[%s283_s30 + $0x8] sm:$0xff]  ;;  %v415_v15 = vld [vmem:[%s283_s30 + $0x10] sm:$0xff] }
  0x14   : > { %791 = vmatpush3.bf16.msra.mxu0 %v790_v5  ;;  %v799_v14 = vpack.c.bf16 %v414_v13, %v413_v12  ;;  %v416_v16 = vld [vmem:[%s283_s30 + $0x18] sm:$0xff]  ;;  %v417_v18 = vld [vmem:[%s283_s30 + $0x20] sm:$0xff]  ;;  %v418_v19 = vld [vmem:[%s283_s30 + $0x28] sm:$0xff] }
  0x15   : > { %792 = vmatprep.subr.bf16.mxu0 %v837_v0  ;;  %v802_v17 = vpack.c.bf16 %v416_v16, %v415_v15  ;;  %v805_v20 = vpack.c.bf16 %v418_v19, %v417_v18  ;;  %v298_v45 = vld [vmem:[%s292_s8] sm:$0xff]  ;;  %v528_v57 = vld [vmem:[%s288_s12 + $0x8] sm:$0xff]  ;;  %v529_v59 = vld [vmem:[%s288_s12 + $0x10] sm:$0xff] }
  0x16   : > { %800 = vmatpush3.bf16.msra.mxu1 %v799_v14  ;;  %v410_v52 = vrot.slane %v298_v45, %v409_v47  ;;  %v527_v56 = vld [vmem:[%s288_s12] sm:$0xff]  ;;  %v530_v60 = vld [vmem:[%s288_s12 + $0x18] sm:$0xff] }
  0x17   : > { %801 = vmatprep.subr.bf16.mxu1 %v837_v0  ;;  %v808_v58 = vpack.c.bf16 %v528_v57, %v527_v56  ;;  %v811_v61 = vpack.c.bf16 %v530_v60, %v529_v59 }
  0x18   : > { %794 = vmatpush3.bf16.msra.mxu0 %v793_v7 }
  0x19   : > { %795 = vmatprep.subr.bf16.mxu0 %v837_v0 }
  0x1a   : > { %803 = vmatpush3.bf16.msra.mxu1 %v802_v17 }
  0x1b   : > { %804 = vmatprep.subr.bf16.mxu1 %v837_v0 }
  0x1c   : > { %797 = vmatpush3.bf16.msra.mxu0 %v796_v10 }
  0x1d   : > { %807 = vmatprep.subr.bf16.mxu0 %v837_v0 }
  0x1e   : > { %806 = vmatpush3.bf16.msra.mxu1 %v805_v20  ;;  %v518_v20 = vsub.s32 2, %v403_v44 }
  0x1f   : > { %761 = vmatmul.mubr.msk.f32.vlgmr.msra.gmra.mrb[0].mxu0 %vm305_vm1, %v297_v11 }
  0x20   : > { %786 = vmatprep.mubr.msk.f32.mxu0 %vm838_vm0, %v839_v1  ;;  %809 = vmatpush3.bf16.msra.mxu0 %v808_v58 }
  0x21   : > { %810 = vmatprep.subr.bf16.mxu0 %v837_v0 }
  0x24   : > { %812 = vmatpush3.bf16.msra.mxu0 %v811_v61 }
  0xf2   : > { %v375_v21 = vpop.f32.mrb[0].mxu0 }
  0xf3   : > { %v379_v22 = vsel %vm305_vm1, %v375_v21, 0.0  ;;  %v387_v23 = vmul.f32 %v375_v21, %v375_v21  ;;  %v762_v24 = vpop.f32.mrb[1].mxu0 }
  0xf4   : > { %v380_v25 = vrot.slane %v379_v22, 4 }
  0xf5   : > { %v388_v26 = vsel %vm305_vm1, %v387_v23, 0.0 }
  0xf6   : > { %v381_v27 = vadd.f32 %v380_v25, %v379_v22  ;;  %v389_v28 = vrot.slane %v388_v26, 4 }
  0xf8   : > { %v382_v29 = vrot.slane %v381_v27, 2  ;;  %v390_v30 = vadd.f32 %v389_v28, %v388_v26 }
  0xfa   : > { %v383_v31 = vadd.f32 %v382_v29, %v381_v27  ;;  %v391_v32 = vrot.slane %v390_v30, 2 }
  0xfc   : > { %v384_v33 = vrot.slane %v383_v31, 1  ;;  %v392_v34 = vadd.f32 %v391_v32, %v390_v30  ;;  %v533_v30 = vsub.s32 4, %v403_v44 }
  0xfe   : > { %v385_v35 = vadd.f32 %v384_v33, %v383_v31  ;;  %v393_v36 = vrot.slane %v392_v34, 1  ;;  %v534_v31 = vrot.slane %v298_v45, %v533_v30 }
 0x100   : > { %v386_v37 = vmul.f32 0.125, %v385_v35  ;;  %v394_v38 = vadd.f32 %v393_v36, %v392_v34 }
 0x102   : > { %v395_v39 = vmul.f32 0.125, %v394_v38  ;;  %v396_v40 = vmul.f32 %v386_v37, %v386_v37  ;;  %v398_v50 = vsub.f32 %v375_v21, %v386_v37  ;;  %v523_v21 = vsub.s32 3, %v403_v44 }
 0x104   : > { %v397_v41 = vsub.f32 %v395_v39, %v396_v40  ;;  %v524_v26 = vrot.slane %v298_v45, %v523_v21 }
 0x106   : > { %v399_v42 = vadd.f32 1e-05, %v397_v41 }
 0x108   : > { %825 = vrsqrt.f32 %v399_v42 }
 0x112   : > { %v826_v48 = vpop.eup %825 }
 0x113   : > { %v401_v49 = vmul.f32 %v826_v48, %v298_v45 }
 0x115   : > { %v405_v51 = vrot.slane %v401_v49, %v404_v46 }
 0x117   : > { %v406_v53 = vmul.f32 %v405_v51, %v398_v50 }
 0x119   : > { %v411_v54 = vadd.f32 %v410_v52, %v406_v53 }
 0x11b   : > { %v412_v55 = vmax.f32 %v411_v54, 0.0 }
 0x11d   : > { %776 = vmatmul.mubr.msk.f32.vlgmr.msra.gmra.mrb[0].mxu1 %vm305_vm1, %v412_v55 }
 0x1f0   : > { %v488_v62 = vpop.f32.mrb[0].mxu1 }
 0x1f1   : > { %v493_v63 = vsel %vm492_vm2, %v488_v62, 0.0  ;;  %v501_v1 = vmul.f32 %v488_v62, %v488_v62  ;;  %v777_v2 = vpop.f32.mrb[1].mxu1 }
 0x1f2   : > { %v494_v3 = vrot.slane %v493_v63, 4 }
 0x1f3   : > { %v502_v4 = vsel %vm492_vm2, %v501_v1, 0.0 }
 0x1f4   : > { %v495_v5 = vadd.f32 %v494_v3, %v493_v63  ;;  %v503_v6 = vrot.slane %v502_v4, 4 }
 0x1f6   : > { %v496_v7 = vrot.slane %v495_v5, 2  ;;  %v504_v8 = vadd.f32 %v503_v6, %v502_v4 }
 0x1f8   : > { %v497_v9 = vadd.f32 %v496_v7, %v495_v5  ;;  %v505_v10 = vrot.slane %v504_v8, 2 }
 0x1fa   : > { %v498_v0 = vrot.slane %v497_v9, 1  ;;  %v506_v11 = vadd.f32 %v505_v10, %v504_v8 }
 0x1fc   : > { %v499_v12 = vadd.f32 %v498_v0, %v497_v9  ;;  %v507_v13 = vrot.slane %v506_v11, 1 }
 0x1fe   : > { %v500_v14 = vmul.f32 0.125, %v499_v12  ;;  %v508_v15 = vadd.f32 %v507_v13, %v506_v11 }
 0x200   : > { %v509_v16 = vmul.f32 0.125, %v508_v15  ;;  %v510_v17 = vmul.f32 %v500_v14, %v500_v14  ;;  %v512_v24 = vsub.f32 %v488_v62, %v500_v14 }
 0x202   : > { %v511_v18 = vsub.f32 %v509_v16, %v510_v17 }
 0x204   : > { %v513_v19 = vadd.f32 1e-05, %v511_v18 }
 0x206   : > { %827 = vrsqrt.f32 %v513_v19 }
 0x210   : > { %v828_v22 = vpop.eup %827 }
 0x211   : > { %v515_v23 = vmul.f32 %v828_v22, %v298_v45 }
 0x213   : > { %v519_v25 = vrot.slane %v515_v23, %v518_v20 }
 0x215   : > { %v520_v27 = vmul.f32 %v519_v25, %v512_v24 }
 0x217   : > { %v525_v28 = vadd.f32 %v524_v26, %v520_v27 }
 0x219   : > { %v526_v29 = vmax.f32 %v525_v28, 0.0 }
 0x21b   : > { %787 = vmatmul.mubr.msk.f32.vlgmr.msra.gmra.mrb[2].mxu0 %vm492_vm2, %v526_v29 }
 0x2ee   : > { %v604_v32 = vpop.f32.mrb[2].mxu0 }
 0x2ef   : > { %v605_v33 = vadd.f32 %v604_v32, %v534_v31  ;;  %v788_v34 = vpop.f32.mrb[3].mxu0 }
 0x2f1   : > { %609 = vst.msk [vmem:[%s296_s15] sm:$0xff] %vm608_vm3, %v605_v33 }
 0x2f2 PF: > { %s15_s18 = sadd.s32 1, %s835_s18  }
 0x2f3   : > { %p12_p4 = scmp.ge.s32.totalorder %s15_s18, 4  }
 0x2f5   :  { %14 = sbr.rel (!%p12_p4) target bundleno = 1 (0x1), region = 82 }

</bundles_post_ra>
